<compile_context>
chip_gen: v7x
topology: tpu7x:2x2x1
jax: 0.10.0
libtpu: 0.0.40
codegen_flags: <defaults>
</compile_context>

<pallas_src>
import functools

import jax
import jax.numpy as jnp
from jax.experimental import pallas as pl
from jax.experimental.pallas import tpu as pltpu


def _round_up(x, m):
    return (x + m - 1) // m * m


def _vmem_caps():
    """(raise-above threshold, hard cap) for the scoped-VMEM limit, generation-aware."""
    try:
        phys = int(pltpu.get_tpu_info().vmem_capacity_bytes)
    except Exception:  # not on TPU / API drift: be conservative (v7x per-core physical)
        phys = 64 * 1024 * 1024
    # Only raise above the smallest scoped default (16 MiB on v5e); never ask for more than
    # ~85% of physical (~54 MiB on v7x, ~108 MiB on v5e/v6e).
    return 16 * 1024 * 1024, int(phys * 0.85)


def _scipy_conv2d_kernel(filt_ref, bias_ref, x_ref, halo_ref, o_ref, ext_ref, *, kh, kw):
    """One (batch tile, output row strip) grid step.

    filt_ref : SMEM (kh*kw,) flat filter taps (scalar reads)
    bias_ref : SMEM (1,)
    x_ref    : VMEM (bt, tile_oh, W_pad)    main input row strip
    halo_ref : VMEM (bt, halo_rows, W_pad)  next-rows halo of the same images
    o_ref    : VMEM (bt, tile_oh, ow_pad)   lane-dense output strip
    ext_ref  : VMEM (bt, tile_oh+halo_rows, W_pad) scratch: strip + halo, contiguous rows
    """
    bt, tile_oh, w_pad = x_ref.shape
    halo_rows = halo_ref.shape[1]
    ow_pad = o_ref.shape[2]

    # Stage the strip + its row halo contiguously so every row tap is a single VMEM load.
    ext_ref[:, pl.ds(0, tile_oh), :] = x_ref[...]
    ext_ref[:, pl.ds(tile_oh, halo_rows), :] = halo_ref[...]

    # Hoist the scalar taps (SMEM reads + scalar->vector broadcasts) out of the accumulate loop.
    taps = [filt_ref[t] for t in range(kh * kw)]

    # f32 accumulator, bias folded into the init.
    acc = jnp.full((bt, tile_oh, ow_pad), bias_ref[0], dtype=jnp.float32)

    # Shift-and-accumulate on the VPU: kh strip loads; column shifts done on the XLU via
    # lane rotation (pltpu.roll).  rolled[..., j] == strip[..., j + v] for all valid output
    # lanes; the wrap-around only touches padded lanes which the wrapper slices off.
    for u in range(kh):
        strip = ext_ref[:, pl.ds(u, tile_oh), :]              # (bt, tile_oh, W_pad)
        for v in range(kw):
            rolled = strip if v == 0 else pltpu.roll(strip, shift=w_pad - v, axis=2)
            acc = acc + rolled[:, :, :ow_pad] * taps[u * kw + v]

    o_ref[...] = acc.astype(o_ref.dtype)


def scipy_conv2d(x, filt, bias, *, acc_budget_bytes=32 * 1024):
    """Pallas equivalent of ScipyConv2d.forward.

    x     : (H, W) single image (module semantics) or (B, H, W) batch.
    filt  : (kh, kw)
    bias  : (1, 1)
    Returns (oh, ow) or (B, oh, ow) with oh = H-kh+1, ow = W-kw+1.
    """
    squeeze = (x.ndim == 2)
    if squeeze:
        x = x[None]
    B, H, W = x.shape
    kh, kw = filt.shape
    oh, ow = H - kh + 1, W - kw + 1

    # --- lane/sublane-dense tiled geometry ---------------------------------------------------
    ow_pad = _round_up(ow, 128)                       # lane-dense output width (unmasked vst)
    W_pad = max(_round_up(W, 128), ow_pad)            # roll-based shifts only need W_pad >= W
    halo_rows = max(8, _round_up(kh - 1, 8))          # row halo, fetched as its own small block

    # Batch tile + row tile sized so the f32 accumulator stays ~<= acc_budget (8 vregs at 32 KiB),
    # leaving headroom in the 64 x 4 KiB vreg file for the strip and rolled temporaries.
    bt = max(1, min(B, 8, acc_budget_bytes // (4 * 8 * ow_pad)))
    max_rows = max(8, (acc_budget_bytes // (4 * ow_pad * bt)) // 8 * 8)
    tile_oh = min(_round_up(oh, 8), max_rows)
    tile_oh = _round_up(tile_oh, halo_rows)           # halo block index must be integral

    B_pad = _round_up(B, bt)
    oh_pad = _round_up(oh, tile_oh)
    H_pad = oh_pad + halo_rows                        # rows reachable by the last strip's halo

    # TODO(synk): the wrapper pad / final slice are separate XLA ops (full HBM pass each); for
    # large images fuse them into producers/consumers or let callers consume the padded layout.
    x_p = jnp.pad(x, ((0, B_pad - B), (0, H_pad - H), (0, W_pad - W)))
    filt_flat = filt.reshape(-1)                      # (kh*kw,) 1-D SMEM, no 2-D SMEM padding
    bias_flat = bias.reshape(-1)[:1]                  # (1,)

    grid = (B_pad // bt, oh_pad // tile_oh)

    # --- generation-aware scoped-VMEM limit (only when the strip working set needs it) --------
    elem = jnp.dtype(x.dtype).itemsize
    per_step = (bt * tile_oh * W_pad + bt * halo_rows * W_pad) * elem      # inputs
    per_step += bt * tile_oh * ow_pad * elem                               # output
    working = 2 * per_step + bt * (tile_oh + halo_rows) * W_pad * elem + (1 << 20)

    raise_above, hard_cap = _vmem_caps()
    cp_kwargs = {"dimension_semantics": ("parallel", "parallel")}
    # TODO(synk): on v7x, pltpu.CORE_PARALLEL on the batch-tile axis guarantees the 2-TC split;
    # kept as "parallel" here for portability across v5e/v6e/v7x.
    if working > raise_above:
        cp_kwargs["vmem_limit_bytes"] = min(max(int(working * 1.25), raise_above), hard_cap)

    kernel = functools.partial(_scipy_conv2d_kernel, kh=kh, kw=kw)

    out = pl.pallas_call(
        kernel,
        out_shape=jax.ShapeDtypeStruct((B_pad, oh_pad, ow_pad), x.dtype),
        grid=grid,
        in_specs=[
            pl.BlockSpec(memory_space=pltpu.SMEM),    # flat filter taps
            pl.BlockSpec(memory_space=pltpu.SMEM),    # bias scalar
            # Main row strip: rows [r*tile_oh, (r+1)*tile_oh) of the bt images in batch tile b.
            pl.BlockSpec((bt, tile_oh, W_pad), lambda b, r: (b, r, 0)),
            # Row halo: rows [(r+1)*tile_oh, (r+1)*tile_oh + halo_rows) of the SAME images,
            # as its own small blocked spec — VMEM stays O(strip), not O(image), and strips
            # pipeline through HBM without whole-image residency.
            pl.BlockSpec((bt, halo_rows, W_pad),
                         lambda b, r: (b, (r + 1) * (tile_oh // halo_rows), 0)),
        ],
        out_specs=pl.BlockSpec((bt, tile_oh, ow_pad), lambda b, r: (b, r, 0)),
        scratch_shapes=[pltpu.VMEM((bt, tile_oh + halo_rows, W_pad), x.dtype)],
        compiler_params=pltpu.CompilerParams(**cp_kwargs),
    )(filt_flat, bias_flat, x_p, x_p)

    out = out[:B, :oh, :ow]
    return out[0] if squeeze else out
    # TODO(synk): when ow << 128, repacking several rows/images into the lane dim before the
    # store would cut the ~9x padded output HBM writeback (review #8); not done here.


if __name__ == "__main__":
    key = jax.random.PRNGKey(0)
    k_x, k_f, k_b = jax.random.split(key, 3)

    # Batch of images to amortize per-step overhead; the module itself is per-image, 3x3 filter.
    B, H, W, KH, KW = 8, 16, 16, 3, 3
    x = jax.random.normal(k_x, (B, H, W), dtype=jnp.float32)
    filt = jax.random.normal(k_f, (KH, KW), dtype=jnp.float32)
    bias = jax.random.normal(k_b, (1, 1), dtype=jnp.float32)

    out = jax.block_until_ready(scipy_conv2d(x, filt, bias))

    # Pure-JAX reference (same valid cross-correlation + bias).
    oh, ow = H - KH + 1, W - KW + 1
    ref = jnp.zeros((B, oh, ow), jnp.float32)
    for u in range(KH):
        for v in range(KW):
            ref = ref + x[:, u:u + oh, v:v + ow] * filt[u, v]
    ref = ref + bias[0, 0]

    assert out.shape == (B, oh, ow)
    assert out.dtype == x.dtype
    assert jnp.allclose(out, ref, atol=1e-5), "batched mismatch vs reference"

    # Single 2-D image path == exact ScipyConv2d.forward semantics.
    out1 = jax.block_until_ready(scipy_conv2d(x[0], filt, bias))
    assert out1.shape == (oh, ow)
    assert jnp.allclose(out1, ref[0], atol=1e-5), "single-image mismatch vs reference"

    print("KERNEL_OK")
</pallas_src>

<mosaic_0001>
module attributes {stable_mosaic.version = 11 : i64} {
  func.func @_scipy_conv2d_kernel(%arg0: i32, %arg1: i32, %arg2: memref<9xf32, #tpu.memory_space<smem>>, %arg3: memref<1xf32, #tpu.memory_space<smem>>, %arg4: memref<8x8x128xf32, #tpu.memory_space<vmem>>, %arg5: memref<8x8x128xf32, #tpu.memory_space<vmem>>, %arg6: memref<8x8x128xf32, #tpu.memory_space<vmem>>, %arg7: memref<8x16x128xf32, #tpu.memory_space<vmem>>) attributes {dimension_semantics = [#tpu.dimension_semantics<parallel>, #tpu.dimension_semantics<parallel>], iteration_bounds = array<i64: 1, 2>, scalar_prefetch = 0 : i64, scratch_operands = 1 : i64, tpu.core_type = #tpu.core_type<tc>, window_params = [{transform_indices = @transform_0, window_bounds = array<i64: 9>}, {transform_indices = @transform_1, window_bounds = array<i64: 1>}, {transform_indices = @transform_2, window_bounds = array<i64: 8, 8, 128>}, {transform_indices = @transform_3, window_bounds = array<i64: 8, 8, 128>}, {transform_indices = @transform_4, window_bounds = array<i64: 8, 8, 128>}]} {
    %c0 = arith.constant 0 : index
    %c0_0 = arith.constant 0 : index
    %c0_1 = arith.constant 0 : index
    %0 = vector.load %arg4[%c0, %c0_0, %c0_1] : memref<8x8x128xf32, #tpu.memory_space<vmem>>, vector<8x8x128xf32>
    %c0_2 = arith.constant 0 : index
    %c0_3 = arith.constant 0 : index
    %c0_4 = arith.constant 0 : index
    %1 = vector.load %arg7[%c0_2, %c0_3, %c0_4] : memref<8x16x128xf32, #tpu.memory_space<vmem>>, vector<8x8x128xf32>
    tpu.vector_store %arg7[%c0_2, %c0_3, %c0_4], %0 {strides = array<i32>} : memref<8x16x128xf32, #tpu.memory_space<vmem>>, vector<8x8x128xf32>,
    %c0_5 = arith.constant 0 : index
    %c0_6 = arith.constant 0 : index
    %c0_7 = arith.constant 0 : index
    %2 = vector.load %arg5[%c0_5, %c0_6, %c0_7] : memref<8x8x128xf32, #tpu.memory_space<vmem>>, vector<8x8x128xf32>
    %c0_8 = arith.constant 0 : index
    %c8 = arith.constant 8 : index
    %c0_9 = arith.constant 0 : index
    %3 = vector.load %arg7[%c0_8, %c8, %c0_9] : memref<8x16x128xf32, #tpu.memory_space<vmem>>, vector<8x8x128xf32>
    tpu.vector_store %arg7[%c0_8, %c8, %c0_9], %2 {strides = array<i32>} : memref<8x16x128xf32, #tpu.memory_space<vmem>>, vector<8x8x128xf32>,
    %c0_10 = arith.constant 0 : index
    %4 = memref.load %arg2[%c0_10] : memref<9xf32, #tpu.memory_space<smem>>
    %c1 = arith.constant 1 : index
    %5 = memref.load %arg2[%c1] : memref<9xf32, #tpu.memory_space<smem>>
    %c2 = arith.constant 2 : index
    %6 = memref.load %arg2[%c2] : memref<9xf32, #tpu.memory_space<smem>>
    %c3 = arith.constant 3 : index
    %7 = memref.load %arg2[%c3] : memref<9xf32, #tpu.memory_space<smem>>
    %c4 = arith.constant 4 : index
    %8 = memref.load %arg2[%c4] : memref<9xf32, #tpu.memory_space<smem>>
    %c5 = arith.constant 5 : index
    %9 = memref.load %arg2[%c5] : memref<9xf32, #tpu.memory_space<smem>>
    %c6 = arith.constant 6 : index
    %10 = memref.load %arg2[%c6] : memref<9xf32, #tpu.memory_space<smem>>
    %c7 = arith.constant 7 : index
    %11 = memref.load %arg2[%c7] : memref<9xf32, #tpu.memory_space<smem>>
    %c8_11 = arith.constant 8 : index
    %12 = memref.load %arg2[%c8_11] : memref<9xf32, #tpu.memory_space<smem>>
    %c0_12 = arith.constant 0 : index
    %13 = memref.load %arg3[%c0_12] : memref<1xf32, #tpu.memory_space<smem>>
    %14 = vector.broadcast %13 : f32 to vector<8x8x128xf32>
    %c0_13 = arith.constant 0 : index
    %c0_14 = arith.constant 0 : index
    %c0_15 = arith.constant 0 : index
    %15 = vector.load %arg7[%c0_13, %c0_14, %c0_15] : memref<8x16x128xf32, #tpu.memory_space<vmem>>, vector<8x8x128xf32>
    %16 = vector.broadcast %4 : f32 to vector<8x8x128xf32>
    %17 = arith.mulf %15, %16 : vector<8x8x128xf32>
    %18 = arith.addf %14, %17 : vector<8x8x128xf32>
    %c127_i32 = arith.constant 127 : i32
    %19 = tpu.dynamic_rotate %15 by %c127_i32 dim 2 : vector<8x8x128xf32>, i32 -> vector<8x8x128xf32>
    %20 = vector.broadcast %5 : f32 to vector<8x8x128xf32>
    %21 = arith.mulf %19, %20 : vector<8x8x128xf32>
    %22 = arith.addf %18, %21 : vector<8x8x128xf32>
    %c126_i32 = arith.constant 126 : i32
    %23 = tpu.dynamic_rotate %15 by %c126_i32 dim 2 : vector<8x8x128xf32>, i32 -> vector<8x8x128xf32>
    %24 = vector.broadcast %6 : f32 to vector<8x8x128xf32>
    %25 = arith.mulf %23, %24 : vector<8x8x128xf32>
    %26 = arith.addf %22, %25 : vector<8x8x128xf32>
    %c0_16 = arith.constant 0 : index
    %c1_17 = arith.constant 1 : index
    %c0_18 = arith.constant 0 : index
    %27 = vector.load %arg7[%c0_16, %c1_17, %c0_18] : memref<8x16x128xf32, #tpu.memory_space<vmem>>, vector<8x8x128xf32>
    %28 = vector.broadcast %7 : f32 to vector<8x8x128xf32>
    %29 = arith.mulf %27, %28 : vector<8x8x128xf32>
    %30 = arith.addf %26, %29 : vector<8x8x128xf32>
    %c127_i32_19 = arith.constant 127 : i32
    %31 = tpu.dynamic_rotate %27 by %c127_i32_19 dim 2 : vector<8x8x128xf32>, i32 -> vector<8x8x128xf32>
    %32 = vector.broadcast %8 : f32 to vector<8x8x128xf32>
    %33 = arith.mulf %31, %32 : vector<8x8x128xf32>
    %34 = arith.addf %30, %33 : vector<8x8x128xf32>
    %c126_i32_20 = arith.constant 126 : i32
    %35 = tpu.dynamic_rotate %27 by %c126_i32_20 dim 2 : vector<8x8x128xf32>, i32 -> vector<8x8x128xf32>
    %36 = vector.broadcast %9 : f32 to vector<8x8x128xf32>
    %37 = arith.mulf %35, %36 : vector<8x8x128xf32>
    %38 = arith.addf %34, %37 : vector<8x8x128xf32>
    %c0_21 = arith.constant 0 : index
    %c2_22 = arith.constant 2 : index
    %c0_23 = arith.constant 0 : index
    %39 = vector.load %arg7[%c0_21, %c2_22, %c0_23] : memref<8x16x128xf32, #tpu.memory_space<vmem>>, vector<8x8x128xf32>
    %40 = vector.broadcast %10 : f32 to vector<8x8x128xf32>
    %41 = arith.mulf %39, %40 : vector<8x8x128xf32>
    %42 = arith.addf %38, %41 : vector<8x8x128xf32>
    %c127_i32_24 = arith.constant 127 : i32
    %43 = tpu.dynamic_rotate %39 by %c127_i32_24 dim 2 : vector<8x8x128xf32>, i32 -> vector<8x8x128xf32>
    %44 = vector.broadcast %11 : f32 to vector<8x8x128xf32>
    %45 = arith.mulf %43, %44 : vector<8x8x128xf32>
    %46 = arith.addf %42, %45 : vector<8x8x128xf32>
    %c126_i32_25 = arith.constant 126 : i32
    %47 = tpu.dynamic_rotate %39 by %c126_i32_25 dim 2 : vector<8x8x128xf32>, i32 -> vector<8x8x128xf32>
    %48 = vector.broadcast %12 : f32 to vector<8x8x128xf32>
    %49 = arith.mulf %47, %48 : vector<8x8x128xf32>
    %50 = arith.addf %46, %49 : vector<8x8x128xf32>
    %c0_26 = arith.constant 0 : index
    %c0_27 = arith.constant 0 : index
    %c0_28 = arith.constant 0 : index
    %51 = vector.load %arg6[%c0_26, %c0_27, %c0_28] : memref<8x8x128xf32, #tpu.memory_space<vmem>>, vector<8x8x128xf32>
    tpu.vector_store %arg6[%c0_26, %c0_27, %c0_28], %50 {strides = array<i32>} : memref<8x8x128xf32, #tpu.memory_space<vmem>>, vector<8x8x128xf32>,
    return
  }
  func.func @transform_0(%arg0: i32, %arg1: i32) -> i32 {
    %c0_i32 = arith.constant 0 : i32
    %c0_i32_0 = arith.constant 0 : i32
    return %c0_i32 : i32
  }
  func.func @transform_1(%arg0: i32, %arg1: i32) -> i32 {
    %c0_i32 = arith.constant 0 : i32
    %c0_i32_0 = arith.constant 0 : i32
    return %c0_i32 : i32
  }
  func.func @transform_2(%arg0: i32, %arg1: i32) -> (i32, i32, i32) {
    %c0_i32 = arith.constant 0 : i32
    %c0_i32_0 = arith.constant 0 : i32
    return %arg0, %arg1, %c0_i32 : i32, i32, i32
  }
  func.func @transform_3(%arg0: i32, %arg1: i32) -> (i32, i32, i32) {
    %c1_i32 = arith.constant 1 : i32
    %0 = arith.addi %arg1, %c1_i32 : i32
    %c1_i32_0 = arith.constant 1 : i32
    %1 = arith.muli %0, %c1_i32_0 : i32
    %c0_i32 = arith.constant 0 : i32
    %c0_i32_1 = arith.constant 0 : i32
    return %arg0, %1, %c0_i32 : i32, i32, i32
  }
  func.func @transform_4(%arg0: i32, %arg1: i32) -> (i32, i32, i32) {
    %c0_i32 = arith.constant 0 : i32
    %c0_i32_0 = arith.constant 0 : i32
    return %arg0, %arg1, %c0_i32 : i32, i32, i32
  }
}

</mosaic_0001>

<bundles_post_ra>
// kernel: tpu_custom_call.1
= control target key start
LH: loop header
LB: loop body
LE: loop exit
PB: predicated region body
PF: predicated region fallthrough
CT: control target
= control target key end

     0   :  { %s1695_s0 = inlined_call_operand.vmem [shape: f32[9], index: 0, kind: input, shape index: {}]   ;;  %s1696_s1 = inlined_call_operand.<no memory space> [shape: f32[1], index: 1, kind: input, shape index: {}]   ;;  %s1697_s2 = inlined_call_operand.hbm [shape: f32[8,24,128], index: 2, kind: input, shape index: {}]   ;;  %s1698_s3 = inlined_call_operand.hbm [shape: f32[8,24,128], index: 3, kind: input, shape index: {}]   ;;  %s1699_s4 = inlined_call_operand.hbm [shape: f32[8,16,128], index: 4, kind: output, shape index: {}]  }
   0x1   :  { %1711 = sst [smem:[#allocation20_spill]] %s1695_s0 }
   0x2   :  { %1712 = sst [smem:[#allocation21_spill]] %s1697_s2 }
   0x3   :  { %9 = sst [smem:[#allocation3]] %s1696_s1 }
   0x4   :  { %10 = vsyncpa [#allocation7], 0 }
   0x5   :  { %11 = vsyncpa [#allocation5], 0 }
   0x6   :  { %13 = vsyncpa [#allocation5 + $0x1], 0 }
   0x7   :  { %14 = vsyncpa [#allocation10], 0 }
   0x8   :  { %16 = vsyncpa [#allocation10 + $0x1], 0 }
   0x9   :  { %17 = vsyncpa [#allocation6], 0 }
   0xa   :  { %19 = vsyncpa [#allocation6 + $0x1], 0  ;;  %s1131_s17 = smov 0   ;;  %s1133_s18 = smov 0  }
   0xb   :  { %s1135_s19 = smov 0   ;;  %s1137_s20 = smov 0  }
   0xc   :  { %s1139_s21 = smov 0   ;;  %s1141_s22 = smov 0  }
   0xd   :  { %s1143_s1 = smov 0   ;;  %s1145_s23 = smov 0  }
   0xe   :  { %s1147_s24 = smov 0  }
   0xf LB: > { %1713 = sst [smem:[#allocation16_spill]] %s1077_s22  ;;  %s763_s25 = sadd.s32 4294967295, %s1089_s24   ;;  %s1089_s24 = sphi %s1147_s24, %s25_s24   ;;  %s1085_s23 = sphi %s1145_s23, %s1750_s23   ;;  %s1081_s1 = sphi %s1143_s1, %s1749_s1   ;;  %s1077_s22 = sphi %s1141_s22, %s1742_s22   ;;  %s1073_s21 = sphi %s1139_s21, %s1748_s21   ;;  %s1069_s20 = sphi %s1137_s20, %s1747_s20   ;;  %s1065_s19 = sphi %s1135_s19, %s1746_s19   ;;  %s1061_s18 = sphi %s1133_s18, %s1745_s18   ;;  %s1057_s17 = sphi %s1131_s17, %s1744_s17  }
  0x10   : > { %s764_s26 = sadd.s32 4294967294, %s1089_s24   ;;  %p95_p0 = scmp.ne.s32.totalorder %s1077_s22, %s1073_s21 }
  0x11   : > { %p1700_p1 = scmp.eq.s32.totalorder %s1089_s24, 0  ;;  %p101_p2 = scmp.ne.s32.totalorder %s1073_s21, %s1069_s20 }
  0x12   : > { %p1181_p3 = scmp.eq.s32.totalorder %s763_s25, 0  ;;  %p131_p5 = scmp.ne.s32.totalorder %s1061_s18, %s1057_s17 }
  0x13   : > { %p1187_p4 = por %p1700_p1, %p95_p0  ;;  %p157_p7 = scmp.eq.s32.totalorder %s763_s25, 1 }
  0x14   : > { %s1714_s27 = scalar_select %p1181_p3, 1, 0 }
  0x15   : > { %p1194_p6 = por %p1181_p3, %p101_p2  ;;  %p1200_p8 = por %p131_p5, %p1181_p3 }
  0x16   : > { %p163_p9 = scmp.eq.s32.totalorder %s764_s26, 1  ;;  %p1204_p10 = por %p157_p7, %p95_p0 }
  0x17   : > { %s1716_s29 = scalar_select %p1194_p6, 1, 0 }
  0x18   : > { %s1717_s30 = scalar_select %p1200_p8, 1, 0 }
  0x19   : > { %s1718_s5 = scalar_select %p1204_p10, 1, 0 }
  0x1a   : > { %p765_p11 = scmp.ge.s32.totalorder %s1089_s24, 1  ;;  %p1209_p12 = por %p163_p9, %p101_p2 }
  0x1b   : > { %p170_p13 = scmp.lt.s32.totalorder %s1089_s24, 3  ;;  %s1721_s0 = sld [smem:[#allocation20_spill]] }
  0x1c   : > { %s1719_s6 = scalar_select %p1209_p12, 1, 0 }
  0x1d   : > { %p1217_p1 = pnand %p765_p11, %p170_p13  ;;  %p1706_p7 = scmp.lt.s32.totalorder %s1089_s24, 2 }
  0x1e   : > { %1720 = sst [smem:[#allocation17_spill]] %s1719_s6  ;;  %s197_s14 = sand.u32 1, %s1077_s22  }
  0x1f   : > { %p799_p5 = pneg %p1217_p1  ;;  %p1236_p9 = pnand %p1706_p7, %p1187_p4 }
  0x21   : > { %s183_s9 = sshll.u32 %s1721_s0, 4  ;;  %p1228_p2 = pnand %p799_p5, %p1181_p3  ;;  %s184_s9 = int_to_ptr.vmem [resolvable:$true] %s183_s9 }
  0x22   : > { %s899_s15 = scalar_lea.vmem %s184_s9, 16  ;;  %p907_p10 = scmp.lt.s32.totalorder %s184_s9, %s184_s9 }
  0x23   : > { %p900_p11 = scmp.ne.s32.totalorder %s184_s9, %s899_s15  ;;  %p901_p13 = pneg %p1228_p2 }
  0x24   : > { %p908_p8 = scmp.lt.s32.totalorder %s899_s15, %s899_s15 }
  0x25   : > { %p902_p0 = pnand %p901_p13, %p900_p11 }
  0x26   : > { %p909_p5 = por %p908_p8, %p907_p10 }
  0x27   : > { %p903_p12 = pneg %p902_p0 }
  0x29   : > { %p910_p6 = pnand %p909_p5, %p903_p12 }
  0x2b   : > { %913 = shalt.err (!%p910_p6)
}
  0x2c   : > { %s1091_s16 = smov [#allocation4]   ;;  %s34_s17 = sadd.s32 1, %s1085_s23 }
  0x2d   : > { %802 = dma.vmem_to_smem (!%p1228_p2), %s184_s9, 16, %s1091_s16, [#allocation7]  }
  0x2e   : > { %p35_p4 = scmp.ge.s32.totalorder %s34_s17, 2  ;;  %s768_s25 = sshll.u32 %s197_s14, 6 }
  0x2f   : > { %s1704_s26 = sshll.u32 %s1085_s23, 7  ;;  %s1726_s2 = sld [smem:[#allocation21_spill]] }
  0x30   : > { %s1247_s28 = scalar_select %p35_p4, 0, %s34_s17  }
  0x31   : > { %s201_s15 = scalar_lea.vmem [#allocation8], %s768_s25  ;;  %s1727_s7 = sadd.s32 1, %s1077_s22 }
  0x32   : > { %1725 = sst [smem:[#allocation18_spill]] %s1247_s28  ;;  %s210_s9 = sshll.u32 %s201_s15, 4  ;;  %s1262_s9 = int_to_ptr.vmem [resolvable:$true] %s210_s9 }
  0x33   : > { %s84_s16 = ssub.s32 %s1085_s23, %s1247_s28  ;;  %s112_s11 = sadd.s32 1, %s1247_s28 }
  0x34   : > { %p86_p6 = scmp.eq.s32.totalorder %s84_s16, 0  ;;  %s1259_s0 = ssub.s32 %s34_s17, %s112_s11 }
  0x35   : > { %s1254_s12 = scalar_lea.hbm %s1726_s2, %s1704_s26  ;;  %s1269_s26 = scalar_lea.sflag [#allocation5], %s197_s14 }
  0x36   : > { %s1267_s8 = scalar_select %p86_p6, %s1077_s22, %s1727_s7  }
  0x37   : > { %s914_s6 = scalar_lea.hbm %s1254_s12, 1024  ;;  %p916_p12 = pneg %p1236_p9 }
  0x38   : > { %1728 = sst [smem:[#allocation19_spill]] %s1267_s8  ;;  %p915_p10 = scmp.ne.s32.totalorder %s1254_s12, %s914_s6 }
  0x39   : > { %s919_s17 = scalar_lea.hbm %s1726_s2, 3072  ;;  %p920_p11 = scmp.lt.u32.totalorder %s1254_s12, %s1726_s2 }
  0x3a   : > { %p917_p0 = pnand %p916_p12, %p915_p10  ;;  %p921_p13 = scmp.lt.u32.totalorder %s919_s17, %s914_s6 }
  0x3b   : > { %p923_p4 = scmp.lt.u32.totalorder %s914_s6, %s1254_s12 }
  0x3c   : > { %p918_p2 = pneg %p917_p0  ;;  %p922_p5 = por %p921_p13, %p920_p11 }
  0x3e   : > { %p924_p6 = por %p923_p4, %p922_p5 }
  0x40   : > { %p925_p7 = pnand %p924_p6, %p918_p2 }
  0x42   : > { %928 = shalt.err (!%p925_p7)
}
  0x43   : > { %s929_s14 = scalar_lea.vmem %s1262_s9, 1024  ;;  %s1092_s7 = smov [#allocation8]  }
  0x44   : > { %p930_p10 = scmp.ne.s32.totalorder %s1262_s9, %s929_s14  ;;  %s934_s25 = sshll.u32 %s1092_s7, 4  ;;  %s935_s25 = int_to_ptr.vmem [resolvable:$false] %s934_s25 }
  0x45   : > { %s936_s11 = scalar_lea.vmem %s935_s25, 2048  ;;  %p937_p3 = scmp.lt.s32.totalorder %s1262_s9, %s935_s25 }
  0x46   : > { %p932_p0 = pnand %p930_p10, %p916_p12  ;;  %p938_p11 = scmp.lt.s32.totalorder %s936_s11, %s929_s14 }
  0x48   : > { %p933_p8 = pneg %p932_p0  ;;  %p939_p13 = por %p938_p11, %p937_p3 }
  0x4a   : > { %p940_p5 = pnand %p939_p13, %p933_p8 }
  0x4c   : > { %943 = shalt.err (!%p940_p5)
}
  0x4d   : > { %s1093_s6 = smov 384   ;;  %s1094_s17 = smov 128  }
  0x4e   : > { %s1095_s15 = smov 8   ;;  %s1729_s16 = sshll.u32 %s1085_s23, 7 }
  0x4f   : > { %806 = dma.hbm_to_vmem [thread:$0]  (!%p1236_p9), %s1254_s12, 1024, %s1262_s9, %s1269_s26, %s1093_s6, %s1094_s17, %s1095_s15  }
  0x50   : > { %s686_s25 = scalar_lea.hbm %s1698_s3, %s1729_s16  ;;  %s118_s11 = sadd.s32 1, %s1065_s19 }
  0x51   : > { %p125_p3 = scmp.ne.s32.totalorder %s1065_s19, %s1061_s18  ;;  %p1730_p7 = scmp.eq.s32.totalorder %s1259_s0, 0 }
  0x52   : > { %p1731_p8 = scmp.eq.s32.totalorder %s1089_s24, 0  ;;  %s220_s28 = sand.u32 1, %s1065_s19  }
  0x53   : > { %s1311_s2 = scalar_select %p1730_p7, %s1065_s19, %s118_s11  }
  0x54   : > { %p127_p12 = por %p125_p3, %p1731_p8  ;;  %s770_s8 = sshll.u32 %s220_s28, 6 }
  0x55   : > { %s1316_s22 = scalar_lea.hbm %s686_s25, 128  ;;  %s224_s13 = scalar_lea.vmem [#allocation9], %s770_s8 }
  0x56   : > { %s234_s26 = sshll.u32 %s224_s13, 4  ;;  %p1732_p9 = scmp.lt.s32.totalorder %s1089_s24, 2  ;;  %s1324_s26 = int_to_ptr.vmem [resolvable:$true] %s234_s26 }
  0x57   : > { %s1326_s0 = scalar_lea.sflag [#allocation10], %s220_s28  ;;  %s974_s9 = scalar_lea.hbm %s686_s25, 1152 }
  0x58   : > { %p1320_p2 = pnand %p1732_p9, %p127_p12  ;;  %p945_p4 = scmp.ne.s32.totalorder %s1316_s22, %s974_s9 }
  0x59   : > { %s949_s14 = scalar_lea.hbm %s1698_s3, 3072  ;;  %p950_p11 = scmp.lt.u32.totalorder %s1316_s22, %s1698_s3 }
  0x5a   : > { %p946_p6 = pneg %p1320_p2  ;;  %p951_p13 = scmp.lt.u32.totalorder %s949_s14, %s974_s9 }
  0x5b   : > { %p953_p3 = scmp.lt.u32.totalorder %s974_s9, %s1316_s22 }
  0x5c   : > { %p947_p10 = pnand %p946_p6, %p945_p4  ;;  %p952_p5 = por %p951_p13, %p950_p11 }
  0x5e   : > { %p948_p0 = pneg %p947_p10  ;;  %p954_p7 = por %p953_p3, %p952_p5 }
  0x60   : > { %p955_p8 = pnand %p954_p7, %p948_p0 }
  0x62   : > { %958 = shalt.err (!%p955_p8)
}
  0x63   : > { %s959_s28 = scalar_lea.vmem %s1324_s26, 1024  ;;  %s1096_s25 = smov [#allocation9]  }
  0x64   : > { %p960_p12 = scmp.ne.s32.totalorder %s1324_s26, %s959_s28  ;;  %s964_s13 = sshll.u32 %s1096_s25, 4  ;;  %s965_s13 = int_to_ptr.vmem [resolvable:$false] %s964_s13 }
  0x65   : > { %s966_s8 = scalar_lea.vmem %s965_s13, 2048  ;;  %p967_p10 = scmp.lt.s32.totalorder %s1324_s26, %s965_s13 }
  0x66   : > { %p962_p9 = pnand %p960_p12, %p946_p6  ;;  %p968_p11 = scmp.lt.s32.totalorder %s966_s8, %s959_s28 }
  0x68   : > { %p963_p4 = pneg %p962_p9  ;;  %p969_p13 = por %p968_p11, %p967_p10 }
  0x6a   : > { %p970_p5 = pnand %p969_p13, %p963_p4 }
  0x6c   : > { %973 = shalt.err (!%p970_p5)
}
  0x6d   : > { %809 = dma.hbm_to_vmem [thread:$0]  (!%p1320_p2), %s1316_s22, 1024, %s1324_s26, %s1326_s0, %s1093_s6, %s1094_s17, %s1095_s15  }
  0x6e   : > { %246 = sbr.rel (%p1217_p1) target bundleno = 356 (0x164), region = 36  ;;  %p1734_p6 = scmp.ne.s32.totalorder (!%p1217_p1), %s1714_s27, 0 }
  0x75   : > { %1040 = dma.done.wait (%p1734_p6), [#allocation7], 16  }
  0x76   : > { %1042 = vsyncadd (%p1734_p6), [#allocation7], 4294967280  ;;  %s1363_s9 = sand.u32 1, %s1073_s21   ;;  %p1735_p2 = scmp.ne.s32.totalorder %s1716_s29, 0 }
  0x77   : > { %s774_s12 = sshll.u32 %s1363_s9, 6  ;;  %s253_s16 = scalar_lea.sflag [#allocation5], %s1363_s9 }
  0x78   : > { %s256_s22 = scalar_lea.vmem [#allocation8], %s774_s12 }
  0x79   : > { %1044 = dma.done.wait (%p1735_p2), %s253_s16, 1024  }
  0x7a   : > { %1046 = vsyncadd (%p1735_p2), %s253_s16, 4294966272  ;;  %s261_s27 = sand.u32 1, %s1061_s18   ;;  %p1736_p1 = scmp.ne.s32.totalorder %s1717_s30, 0 }
  0x7b   : > { %s775_s10 = sshll.u32 %s261_s27, 6  ;;  %s262_s6 = scalar_lea.sflag [#allocation10], %s261_s27 }
  0x7c   : > { %s1374_s17 = scalar_lea.vmem [#allocation9], %s775_s10 }
  0x7d   : > { %1048 = dma.done.wait (%p1736_p1), %s262_s6, 1024  }
  0x7e   : > { %1050 = vsyncadd (%p1736_p1), %s262_s6, 4294966272 }
  0x7f   : > { %270 = sfence }
  0x80   : > { %v1380_v0 = vld [vmem:[%s256_s22 + $0x10] sm:$0xff]  ;;  %v1382_v1 = vld [vmem:[%s256_s22] sm:$0xff]  ;;  %v1384_v2 = vld [vmem:[%s256_s22 + $0x18] sm:$0xff]  ;;  %s1097_s29 = smov 127   ;;  %s1098_s30 = smov 126  }
  0x81   : > { %310 = vst [vmem:[#allocation2 + $0x20] sm:$0xff] %v1380_v0  ;;  %372 = vrot.lane.b32.xlu1 %v1380_v0, %s1097_s29  ;;  %308 = vst [vmem:[#allocation2] sm:$0xff] %v1382_v1  ;;  %368 = vrot.lane.b32.xlu0 %v1382_v1, %s1097_s29  ;;  %v1393_v3 = vld [vmem:[%s256_s22 + $0x8] sm:$0xff]  ;;  %v1399_v5 = vld [vmem:[%s256_s22 + $0x20] sm:$0xff]  ;;  %s332_s15 = sld [smem:[#allocation4]]  ;;  %s341_s26 = sld [smem:[#allocation3]] }
  0x82   : > { %311 = vst [vmem:[#allocation2 + $0x30] sm:$0xff] %v1384_v2  ;;  %v1395_v4 = vld [vmem:[%s256_s22 + $0x28] sm:$0xff]  ;;  %309 = vst [vmem:[#allocation2 + $0x10] sm:$0xff] %v1393_v3  ;;  %v1401_v6 = vld [vmem:[%s256_s22 + $0x38] sm:$0xff]  ;;  %s777_s0 = sld [smem:[#allocation4 + $0x1]]  ;;  %s779_s14 = sld [smem:[#allocation4 + $0x3]] }
  0x83   : > { %313 = vst [vmem:[#allocation2 + $0x50] sm:$0xff] %v1395_v4  ;;  %v1403_v7 = vld [vmem:[%s256_s22 + $0x30] sm:$0xff]  ;;  %312 = vst [vmem:[#allocation2 + $0x40] sm:$0xff] %v1399_v5  ;;  %v317_v8 = vld [vmem:[%s1374_s17 + $0x8] sm:$0xff]  ;;  %s778_s7 = sld [smem:[#allocation4 + $0x2]]  ;;  %s780_s11 = sld [smem:[#allocation4 + $0x4]] }
  0x84   : > { %315 = vst [vmem:[#allocation2 + $0x70] sm:$0xff] %v1401_v6  ;;  %314 = vst [vmem:[#allocation2 + $0x60] sm:$0xff] %v1403_v7  ;;  %v316_v9 = vld [vmem:[%s1374_s17] sm:$0xff]  ;;  %v319_v10 = vld [vmem:[%s1374_s17 + $0x18] sm:$0xff]  ;;  %s781_s28 = sld [smem:[#allocation4 + $0x5]]  ;;  %s782_s25 = sld [smem:[#allocation4 + $0x6]] }
  0x85   : > { %325 = vst [vmem:[#allocation2 + $0x18] sm:$0xff] %v317_v8  ;;  %324 = vst [vmem:[#allocation2 + $0x8] sm:$0xff] %v316_v9  ;;  %v318_v11 = vld [vmem:[%s1374_s17 + $0x10] sm:$0xff]  ;;  %v321_v12 = vld [vmem:[%s1374_s17 + $0x28] sm:$0xff]  ;;  %374 = vrot.lane.b32.xlu1 %v1384_v2, %s1097_s29  ;;  %370 = vrot.lane.b32.xlu0 %v1393_v3, %s1097_s29  ;;  %s783_s13 = sld [smem:[#allocation4 + $0x7]]  ;;  %s784_s8 = sld [smem:[#allocation4 + $0x8]] }
  0x86   : > { %327 = vst [vmem:[#allocation2 + $0x38] sm:$0xff] %v319_v10  ;;  %v320_v13 = vld [vmem:[%s1374_s17 + $0x20] sm:$0xff]  ;;  %326 = vst [vmem:[#allocation2 + $0x28] sm:$0xff] %v318_v11  ;;  %v323_v14 = vld [vmem:[%s1374_s17 + $0x38] sm:$0xff]  ;;  %s1608_s16 = scalar_lea.vmem [#allocation11], %s774_s12  ;;  %s786_s22 = sshll.u32 %s1081_s1, 7 }
  0x87   : > { %329 = vst [vmem:[#allocation2 + $0x58] sm:$0xff] %v321_v12  ;;  %328 = vst [vmem:[#allocation2 + $0x48] sm:$0xff] %v320_v13  ;;  %v322_v15 = vld [vmem:[%s1374_s17 + $0x30] sm:$0xff]  ;;  %v351_v32 = vstv %s332_s15  ;;  %v342_v35 = vstv %s341_s26  ;;  %s640_s12 = sshll.u32 %s1608_s16, 4  ;;  %s1635_s1 = scalar_lea.hbm %s1699_s4, %s786_s22  ;;  %s1626_s12 = int_to_ptr.vmem [resolvable:$true] %s640_s12 }
  0x88   : > { %331 = vst [vmem:[#allocation2 + $0x78] sm:$0xff] %v323_v14  ;;  %330 = vst [vmem:[#allocation2 + $0x68] sm:$0xff] %v322_v15  ;;  %v354_v33 = vmul.f32 %v351_v32, %v1380_v0  ;;  %v352_v34 = vmul.f32 %v351_v32, %v1382_v1  ;;  %v384_v36 = vstv %s777_s0  ;;  %v355_v37 = vmul.f32 %v351_v32, %v1384_v2  ;;  %s625_s6 = scalar_lea.sflag [#allocation6], %s1363_s9  ;;  %s975_s17 = scalar_lea.vmem %s1626_s12, 1024 }
  0x89   : > { %378 = vrot.lane.b32.xlu1 %v1395_v4, %s1097_s29  ;;  %376 = vrot.lane.b32.xlu0 %v1399_v5, %s1097_s29  ;;  %v357_v44 = vmul.f32 %v351_v32, %v1395_v4  ;;  %v356_v45 = vmul.f32 %v351_v32, %v1399_v5  ;;  %v359_v52 = vmul.f32 %v351_v32, %v1401_v6  ;;  %v417_v10 = vstv %s778_s7  ;;  %p976_p0 = scmp.ne.s32.totalorder %s1626_s12, %s975_s17  ;;  %p1737_p3 = scmp.ne.s32.totalorder %s1718_s5, 0 }
  0x8a   : > { %v362_v38 = vadd.f32 %v354_v33, %v342_v35  ;;  %v360_v39 = vadd.f32 %v352_v34, %v342_v35  ;;  %v363_v48 = vadd.f32 %v355_v37, %v342_v35  ;;  %v358_v53 = vmul.f32 %v351_v32, %v1403_v7 }
  0x8b   : > { %v365_v55 = vadd.f32 %v357_v44, %v342_v35  ;;  %v364_v56 = vadd.f32 %v356_v45, %v342_v35  ;;  %v353_v59 = vmul.f32 %v351_v32, %v1393_v3  ;;  %p977_p7 = pnand %p976_p0, %p1737_p3 }
  0x8c   : > { %v1444_v16 = vld [vmem:[#allocation2 + $0x11] sm:$0xff]  ;;  %v1446_v17 = vld [vmem:[#allocation2 + $0x1] sm:$0xff] }
  0x8d   : > { %382 = vrot.lane.b32.xlu1 %v1401_v6, %s1097_s29  ;;  %380 = vrot.lane.b32.xlu0 %v1403_v7, %s1097_s29  ;;  %v1452_v18 = vld [vmem:[#allocation2 + $0x31] sm:$0xff]  ;;  %v1454_v19 = vld [vmem:[#allocation2 + $0x21] sm:$0xff]  ;;  %p978_p8 = pneg %p977_p7 }
  0x8e   : > { %v1460_v20 = vld [vmem:[#allocation2 + $0x51] sm:$0xff]  ;;  %v1462_v21 = vld [vmem:[#allocation2 + $0x41] sm:$0xff] }
  0x8f   : > { %v1468_v22 = vld [vmem:[#allocation2 + $0x71] sm:$0xff]  ;;  %v1470_v23 = vld [vmem:[#allocation2 + $0x61] sm:$0xff] }
  0x90   : > { %v1492_v24 = vld [vmem:[#allocation2 + $0x12] sm:$0xff]  ;;  %v1494_v25 = vld [vmem:[#allocation2 + $0x2] sm:$0xff] }
  0x91   : > { %403 = vrot.lane.b32.xlu1 %v1393_v3, %s1098_s30  ;;  %401 = vrot.lane.b32.xlu0 %v1382_v1, %s1098_s30  ;;  %v1500_v26 = vld [vmem:[#allocation2 + $0x32] sm:$0xff]  ;;  %v1502_v27 = vld [vmem:[#allocation2 + $0x22] sm:$0xff]  ;;  %v366_v1 = vadd.f32 %v358_v53, %v342_v35 }
  0x92   : > { %v1508_v28 = vld [vmem:[#allocation2 + $0x52] sm:$0xff]  ;;  %v1510_v29 = vld [vmem:[#allocation2 + $0x42] sm:$0xff] }
  0x93   : > { %v1516_v30 = vld [vmem:[#allocation2 + $0x72] sm:$0xff]  ;;  %v1518_v31 = vld [vmem:[#allocation2 + $0x62] sm:$0xff] }
  0x95   : > { %407 = vrot.lane.b32.xlu1 %v1384_v2, %s1098_s30  ;;  %405 = vrot.lane.b32.xlu0 %v1380_v0, %s1098_s30  ;;  %v367_v0 = vadd.f32 %v359_v52, %v342_v35  ;;  %v442_v2 = vstv %s779_s14 }
  0x96   : > { %v444_v13 = vmul.f32 %v442_v2, %v1444_v16  ;;  %v443_v15 = vmul.f32 %v442_v2, %v1446_v17 }
  0x99   : > { %411 = vrot.lane.b32.xlu1 %v1395_v4, %s1098_s30  ;;  %409 = vrot.lane.b32.xlu0 %v1399_v5, %s1098_s30 }
  0x9d   : > { %415 = vrot.lane.b32.xlu1 %v1401_v6, %s1098_s30  ;;  %413 = vrot.lane.b32.xlu0 %v1403_v7, %s1098_s30  ;;  %v361_v6 = vadd.f32 %v353_v59, %v342_v35  ;;  %v445_v35 = vmul.f32 %v442_v2, %v1454_v19 }
  0xa1   : > { %461 = vrot.lane.b32.xlu1 %v1444_v16, %s1097_s29  ;;  %459 = vrot.lane.b32.xlu0 %v1446_v17, %s1097_s29 }
  0xa5   : > { %465 = vrot.lane.b32.xlu1 %v1452_v18, %s1097_s29  ;;  %463 = vrot.lane.b32.xlu0 %v1454_v19, %s1097_s29 }
  0xa9   : > { %469 = vrot.lane.b32.xlu1 %v1460_v20, %s1097_s29  ;;  %467 = vrot.lane.b32.xlu0 %v1462_v21, %s1097_s29 }
  0xad   : > { %473 = vrot.lane.b32.xlu1 %v1468_v22, %s1097_s29  ;;  %471 = vrot.lane.b32.xlu0 %v1470_v23, %s1097_s29 }
  0xb1   : > { %494 = vrot.lane.b32.xlu1 %v1444_v16, %s1098_s30  ;;  %492 = vrot.lane.b32.xlu0 %v1446_v17, %s1098_s30  ;;  %v447_v17 = vmul.f32 %v442_v2, %v1462_v21 }
  0xb5   : > { %498 = vrot.lane.b32.xlu1 %v1452_v18, %s1098_s30  ;;  %496 = vrot.lane.b32.xlu0 %v1454_v19, %s1098_s30 }
  0xb9   : > { %502 = vrot.lane.b32.xlu1 %v1460_v20, %s1098_s30  ;;  %500 = vrot.lane.b32.xlu0 %v1462_v21, %s1098_s30 }
  0xbd   : > { %506 = vrot.lane.b32.xlu1 %v1468_v22, %s1098_s30  ;;  %504 = vrot.lane.b32.xlu0 %v1470_v23, %s1098_s30 }
  0xc1   : > { %552 = vrot.lane.b32.xlu1 %v1492_v24, %s1097_s29  ;;  %550 = vrot.lane.b32.xlu0 %v1494_v25, %s1097_s29 }
  0xc5   : > { %556 = vrot.lane.b32.xlu1 %v1500_v26, %s1097_s29  ;;  %554 = vrot.lane.b32.xlu0 %v1502_v27, %s1097_s29 }
  0xc9   : > { %560 = vrot.lane.b32.xlu1 %v1508_v28, %s1097_s29  ;;  %558 = vrot.lane.b32.xlu0 %v1510_v29, %s1097_s29 }
  0xcd   : > { %564 = vrot.lane.b32.xlu1 %v1516_v30, %s1097_s29  ;;  %562 = vrot.lane.b32.xlu0 %v1518_v31, %s1097_s29  ;;  %s1099_s29 = smov [#allocation11]  }
  0xd1   : > { %585 = vrot.lane.b32.xlu1 %v1492_v24, %s1098_s30  ;;  %583 = vrot.lane.b32.xlu0 %v1494_v25, %s1098_s30 }
  0xd5   : > { %589 = vrot.lane.b32.xlu1 %v1500_v26, %s1098_s30  ;;  %587 = vrot.lane.b32.xlu0 %v1502_v27, %s1098_s30 }
  0xd9   : > { %593 = vrot.lane.b32.xlu1 %v1508_v28, %s1098_s30  ;;  %591 = vrot.lane.b32.xlu0 %v1510_v29, %s1098_s30 }
  0xdd   : > { %597 = vrot.lane.b32.xlu1 %v1516_v30, %s1098_s30  ;;  %595 = vrot.lane.b32.xlu0 %v1518_v31, %s1098_s30  ;;  %s979_s30 = sshll.u32 %s1099_s29, 4  ;;  %s980_s30 = int_to_ptr.vmem [resolvable:$false] %s979_s30 }
  0xde   : > { %s981_s15 = scalar_lea.vmem %s980_s30, 2048  ;;  %p982_p12 = scmp.lt.s32.totalorder %s1626_s12, %s980_s30 }
  0xdf   : > { %p983_p9 = scmp.lt.s32.totalorder %s981_s15, %s975_s17 }
  0xe1   : > { %p984_p4 = por %p983_p9, %p982_p12 }
  0xe3   : > { %p985_p10 = pnand %p984_p4, %p978_p8 }
  0xf3   : > { %v373_v40 = vpop.permute.xlu1 %372  ;;  %v369_v41 = vpop.permute.xlu0 %368 }
  0xf4   : > { %v387_v42 = vmul.f32 %v384_v36, %v373_v40  ;;  %v385_v43 = vmul.f32 %v384_v36, %v369_v41 }
  0xf6   : > { %v395_v46 = vadd.f32 %v387_v42, %v362_v38  ;;  %v393_v47 = vadd.f32 %v385_v43, %v360_v39  ;;  %v446_v39 = vmul.f32 %v442_v2, %v1452_v18 }
  0xf7   : > { %v375_v49 = vpop.permute.xlu1 %374  ;;  %v371_v50 = vpop.permute.xlu0 %370 }
  0xf8   : > { %v388_v51 = vmul.f32 %v384_v36, %v375_v49  ;;  %v386_v8 = vmul.f32 %v384_v36, %v371_v50 }
  0xfa   : > { %v396_v54 = vadd.f32 %v388_v51, %v363_v48  ;;  %v394_v32 = vadd.f32 %v386_v8, %v361_v6  ;;  %v448_v48 = vmul.f32 %v442_v2, %v1460_v20 }
  0xfb   : > { %v379_v57 = vpop.permute.xlu1 %378  ;;  %v377_v58 = vpop.permute.xlu0 %376 }
  0xfc   : > { %v390_v60 = vmul.f32 %v384_v36, %v379_v57  ;;  %v389_v61 = vmul.f32 %v384_v36, %v377_v58 }
  0xfe   : > { %v398_v62 = vadd.f32 %v390_v60, %v365_v55  ;;  %v397_v63 = vadd.f32 %v389_v61, %v364_v56  ;;  %v450_v55 = vmul.f32 %v442_v2, %v1468_v22  ;;  %v449_v56 = vmul.f32 %v442_v2, %v1470_v23 }
  0xff   : > { %v383_v4 = vpop.permute.xlu1 %382  ;;  %v381_v5 = vpop.permute.xlu0 %380 }
 0x100   : > { %v392_v9 = vmul.f32 %v384_v36, %v383_v4  ;;  %v391_v7 = vmul.f32 %v384_v36, %v381_v5 }
 0x102   : > { %v400_v11 = vadd.f32 %v392_v9, %v367_v0  ;;  %v399_v12 = vadd.f32 %v391_v7, %v366_v1 }
 0x103   : > { %v404_v14 = vpop.permute.xlu1 %403  ;;  %v402_v3 = vpop.permute.xlu0 %401 }
 0x104   : > { %v419_v33 = vmul.f32 %v417_v10, %v404_v14  ;;  %v418_v34 = vmul.f32 %v417_v10, %v402_v3  ;;  %v475_v14 = vstv %s780_s11 }
 0x106   : > { %v427_v37 = vadd.f32 %v419_v33, %v394_v32  ;;  %v426_v38 = vadd.f32 %v418_v34, %v393_v47  ;;  %v508_v32 = vstv %s781_s28 }
 0x107   : > { %v408_v40 = vpop.permute.xlu1 %407  ;;  %v406_v36 = vpop.permute.xlu0 %405 }
 0x108   : > { %v421_v41 = vmul.f32 %v417_v10, %v408_v40  ;;  %v420_v42 = vmul.f32 %v417_v10, %v406_v36  ;;  %v452_v43 = vadd.f32 %v444_v13, %v427_v37  ;;  %v451_v44 = vadd.f32 %v443_v15, %v426_v38 }
 0x10a   : > { %v429_v16 = vadd.f32 %v421_v41, %v396_v54  ;;  %v428_v45 = vadd.f32 %v420_v42, %v395_v46 }
 0x10b   : > { %v412_v49 = vpop.permute.xlu1 %411  ;;  %v410_v50 = vpop.permute.xlu0 %409 }
 0x10c   : > { %v423_v51 = vmul.f32 %v417_v10, %v412_v49  ;;  %v422_v47 = vmul.f32 %v417_v10, %v410_v50  ;;  %v1554_v52 = vadd.f32 %v446_v39, %v429_v16  ;;  %v1556_v18 = vadd.f32 %v445_v35, %v428_v45 }
 0x10d   : > { %v1572_v39 = vstv %s782_s25 }
 0x10e   : > { %v431_v19 = vadd.f32 %v423_v51, %v398_v62  ;;  %v430_v53 = vadd.f32 %v422_v47, %v397_v63  ;;  %v535_v42 = vmul.f32 %v1572_v39, %v1492_v24  ;;  %v534_v49 = vmul.f32 %v1572_v39, %v1494_v25 }
 0x10f   : > { %v416_v54 = vpop.permute.xlu1 %415  ;;  %v414_v46 = vpop.permute.xlu0 %413  ;;  %v1578_v47 = vstv %s783_s13 }
 0x110   : > { %v425_v57 = vmul.f32 %v417_v10, %v416_v54  ;;  %v424_v20 = vmul.f32 %v417_v10, %v414_v46  ;;  %v1560_v58 = vadd.f32 %v448_v48, %v431_v19  ;;  %v1562_v21 = vadd.f32 %v447_v17, %v430_v53 }
 0x112   : > { %v433_v59 = vadd.f32 %v425_v57, %v400_v11  ;;  %v432_v60 = vadd.f32 %v424_v20, %v399_v12  ;;  %v536_v20 = vmul.f32 %v1572_v39, %v1502_v27 }
 0x113   : > { %v462_v61 = vpop.permute.xlu1 %461  ;;  %v460_v0 = vpop.permute.xlu0 %459 }
 0x114   : > { %v1564_v1 = vadd.f32 %v450_v55, %v433_v59  ;;  %v1566_v62 = vadd.f32 %v449_v56, %v432_v60  ;;  %v477_v33 = vmul.f32 %v475_v14, %v462_v61  ;;  %v476_v34 = vmul.f32 %v475_v14, %v460_v0 }
 0x115   : > { %v1588_v61 = vstv %s784_s8 }
 0x116   : > { %v485_v36 = vadd.f32 %v477_v33, %v452_v43  ;;  %v484_v41 = vadd.f32 %v476_v34, %v451_v44  ;;  %v537_v43 = vmul.f32 %v1572_v39, %v1500_v26 }
 0x117   : > { %v466_v63 = vpop.permute.xlu1 %465  ;;  %v464_v22 = vpop.permute.xlu0 %463 }
 0x118   : > { %v479_v16 = vmul.f32 %v475_v14, %v466_v63  ;;  %v478_v45 = vmul.f32 %v475_v14, %v464_v22 }
 0x11a   : > { %v487_v24 = vadd.f32 %v479_v16, %v1554_v52  ;;  %v486_v56 = vadd.f32 %v478_v45, %v1556_v18  ;;  %v539_v52 = vmul.f32 %v1572_v39, %v1508_v28  ;;  %v538_v18 = vmul.f32 %v1572_v39, %v1510_v29 }
 0x11b   : > { %v470_v4 = vpop.permute.xlu1 %469  ;;  %v468_v23 = vpop.permute.xlu0 %467 }
 0x11c   : > { %v481_v44 = vmul.f32 %v475_v14, %v470_v4  ;;  %v480_v55 = vmul.f32 %v475_v14, %v468_v23 }
 0x11e   : > { %v489_v4 = vadd.f32 %v481_v44, %v1560_v58  ;;  %v488_v23 = vadd.f32 %v480_v55, %v1562_v21 }
 0x11f   : > { %v474_v2 = vpop.permute.xlu1 %473  ;;  %v472_v5 = vpop.permute.xlu0 %471 }
 0x120   : > { %v482_v27 = vmul.f32 %v475_v14, %v472_v5 }
 0x123   : > { %v495_v6 = vpop.permute.xlu1 %494  ;;  %v493_v8 = vpop.permute.xlu0 %492 }
 0x124   : > { %v510_v35 = vmul.f32 %v508_v32, %v495_v6  ;;  %v509_v40 = vmul.f32 %v508_v32, %v493_v8  ;;  %v483_v6 = vmul.f32 %v475_v14, %v474_v2 }
 0x126   : > { %v518_v50 = vadd.f32 %v510_v35, %v485_v36  ;;  %v517_v51 = vadd.f32 %v509_v40, %v484_v41  ;;  %v491_v35 = vadd.f32 %v483_v6, %v1564_v1 }
 0x127   : > { %v499_v9 = vpop.permute.xlu1 %498  ;;  %v497_v7 = vpop.permute.xlu0 %496 }
 0x128   : > { %v512_v19 = vmul.f32 %v508_v32, %v499_v9  ;;  %v511_v53 = vmul.f32 %v508_v32, %v497_v7  ;;  %v543_v59 = vadd.f32 %v535_v42, %v518_v50  ;;  %v542_v60 = vadd.f32 %v534_v49, %v517_v51 }
 0x12a   : > { %v520_v26 = vadd.f32 %v512_v19, %v487_v24  ;;  %v519_v0 = vadd.f32 %v511_v53, %v486_v56 }
 0x12b   : > { %v503_v10 = vpop.permute.xlu1 %502  ;;  %v501_v11 = vpop.permute.xlu0 %500 }
 0x12c   : > { %v514_v63 = vmul.f32 %v508_v32, %v503_v10  ;;  %v513_v22 = vmul.f32 %v508_v32, %v501_v11  ;;  %v545_v58 = vadd.f32 %v537_v43, %v520_v26  ;;  %v544_v34 = vadd.f32 %v536_v20, %v519_v0 }
 0x12e   : > { %v522_v33 = vadd.f32 %v514_v63, %v489_v4  ;;  %v521_v29 = vadd.f32 %v513_v22, %v488_v23 }
 0x12f   : > { %v1568_v12 = vpop.permute.xlu1 %506  ;;  %v1570_v13 = vpop.permute.xlu0 %504 }
 0x130   : > { %v516_v21 = vmul.f32 %v508_v32, %v1568_v12  ;;  %v515_v2 = vmul.f32 %v508_v32, %v1570_v13  ;;  %v540_v13 = vmul.f32 %v1572_v39, %v1518_v31  ;;  %v547_v32 = vadd.f32 %v539_v52, %v522_v33 }
 0x131   : > { %v546_v45 = vadd.f32 %v538_v18, %v521_v29 }
 0x133   : > { %v553_v3 = vpop.permute.xlu1 %552  ;;  %v551_v15 = vpop.permute.xlu0 %550 }
 0x134   : > { %v568_v54 = vmul.f32 %v1578_v47, %v553_v3  ;;  %v567_v46 = vmul.f32 %v1578_v47, %v551_v15 }
 0x136   : > { %v576_v8 = vadd.f32 %v568_v54, %v543_v59  ;;  %v575_v9 = vadd.f32 %v567_v46, %v542_v60 }
 0x137   : > { %v557_v37 = vpop.permute.xlu1 %556  ;;  %v555_v38 = vpop.permute.xlu0 %554 }
 0x138   : > { %v570_v15 = vmul.f32 %v1578_v47, %v557_v37  ;;  %v569_v10 = vmul.f32 %v1578_v47, %v555_v38  ;;  %v490_v37 = vadd.f32 %v482_v27, %v1566_v62  ;;  %v541_v62 = vmul.f32 %v1572_v39, %v1516_v30 }
 0x13a   : > { %v578_v42 = vadd.f32 %v570_v15, %v545_v58  ;;  %v577_v16 = vadd.f32 %v569_v10, %v544_v34 }
 0x13b   : > { %v561_v48 = vpop.permute.xlu1 %560  ;;  %v559_v17 = vpop.permute.xlu0 %558 }
 0x13c   : > { %v572_v38 = vmul.f32 %v1578_v47, %v561_v48  ;;  %v571_v40 = vmul.f32 %v1578_v47, %v559_v17  ;;  %v524_v48 = vadd.f32 %v516_v21, %v491_v35  ;;  %v523_v17 = vadd.f32 %v515_v2, %v490_v37 }
 0x13e   : > { %v580_v51 = vadd.f32 %v572_v38, %v547_v32  ;;  %v579_v19 = vadd.f32 %v571_v40, %v546_v45  ;;  %v549_v39 = vadd.f32 %v541_v62, %v524_v48  ;;  %v548_v24 = vadd.f32 %v540_v13, %v523_v17 }
 0x13f   : > { %v565_v25 = vpop.permute.xlu1 %564  ;;  %v563_v57 = vpop.permute.xlu0 %562 }
 0x140   : > { %v574_v44 = vmul.f32 %v1578_v47, %v565_v25  ;;  %v573_v55 = vmul.f32 %v1578_v47, %v563_v57 }
 0x142   : > { %v582_v47 = vadd.f32 %v574_v44, %v549_v39  ;;  %v581_v57 = vadd.f32 %v573_v55, %v548_v24 }
 0x143   : > { %v586_v7 = vpop.permute.xlu1 %585  ;;  %v584_v3 = vpop.permute.xlu0 %583 }
 0x144   : > { %v601_v11 = vmul.f32 %v1588_v61, %v586_v7  ;;  %v600_v28 = vmul.f32 %v1588_v61, %v584_v3 }
 0x146   : > { %v609_v5 = vadd.f32 %v601_v11, %v576_v8  ;;  %v608_v14 = vadd.f32 %v600_v28, %v575_v9 }
 0x147   : > { %v590_v36 = vpop.permute.xlu1 %589  ;;  %v588_v41 = vpop.permute.xlu0 %587 }
 0x148   : > { %617 = vst [vmem:[%s1608_s16 + $0x8] sm:$0xff] %v609_v5  ;;  %616 = vst [vmem:[%s1608_s16] sm:$0xff] %v608_v14  ;;  %v603_v12 = vmul.f32 %v1588_v61, %v590_v36  ;;  %v602_v1 = vmul.f32 %v1588_v61, %v588_v41 }
 0x14a   : > { %v611_v49 = vadd.f32 %v603_v12, %v578_v42  ;;  %v610_v50 = vadd.f32 %v602_v1, %v577_v16 }
 0x14b   : > { %v594_v53 = vpop.permute.xlu1 %593  ;;  %v592_v43 = vpop.permute.xlu0 %591 }
 0x14c   : > { %619 = vst [vmem:[%s1608_s16 + $0x18] sm:$0xff] %v611_v49  ;;  %618 = vst [vmem:[%s1608_s16 + $0x10] sm:$0xff] %v610_v50  ;;  %v605_v30 = vmul.f32 %v1588_v61, %v594_v53  ;;  %v604_v31 = vmul.f32 %v1588_v61, %v592_v43 }
 0x14e   : > { %v613_v56 = vadd.f32 %v605_v30, %v580_v51  ;;  %v612_v54 = vadd.f32 %v604_v31, %v579_v19 }
 0x14f   : > { %v598_v46 = vpop.permute.xlu1 %597  ;;  %v596_v25 = vpop.permute.xlu0 %595 }
 0x150   : > { %621 = vst [vmem:[%s1608_s16 + $0x28] sm:$0xff] %v613_v56  ;;  %620 = vst [vmem:[%s1608_s16 + $0x20] sm:$0xff] %v612_v54  ;;  %v607_v20 = vmul.f32 %v1588_v61, %v598_v46  ;;  %v606_v59 = vmul.f32 %v1588_v61, %v596_v25 }
 0x152   : > { %v615_v60 = vadd.f32 %v607_v20, %v582_v47  ;;  %v614_v26 = vadd.f32 %v606_v59, %v581_v57 }
 0x154   : > { %623 = vst [vmem:[%s1608_s16 + $0x38] sm:$0xff] %v615_v60  ;;  %622 = vst [vmem:[%s1608_s16 + $0x30] sm:$0xff] %v614_v26 }
 0x155   : > { %988 = shalt.err (!%p985_p10)
}
 0x156   : > { %s989_s26 = scalar_lea.hbm %s1635_s1, 1024  ;;  %s993_s7 = scalar_lea.hbm %s1699_s4, 2048 }
 0x157   : > { %p990_p11 = scmp.ne.s32.totalorder %s1635_s1, %s989_s26  ;;  %p994_p6 = scmp.lt.u32.totalorder %s1635_s1, %s1699_s4 }
 0x158   : > { %p995_p2 = scmp.lt.u32.totalorder %s993_s7, %s989_s26  ;;  %p997_p0 = scmp.lt.u32.totalorder %s989_s26, %s1635_s1 }
 0x159   : > { %p991_p13 = pnand %p990_p11, %p1737_p3 }
 0x15a   : > { %p996_p1 = por %p995_p2, %p994_p6 }
 0x15b   : > { %p992_p5 = pneg %p991_p13 }
 0x15c   : > { %p998_p7 = por %p997_p0, %p996_p1 }
 0x15e   : > { %p999_p8 = pnand %p998_p7, %p992_p5 }
 0x160   : > { %1002 = shalt.err (!%p999_p8)
}
 0x161   : > { %s1100_s25 = smov 128   ;;  %s1101_s13 = smov 256  }
 0x162   : > { %s1102_s8 = smov 8  }
 0x163   : > { %797 = dma.vmem_to_hbm [thread:$0]  (%p1737_p3), %s1626_s12, 1024, %s1635_s1, %s625_s6, %s1100_s25, %s1101_s13, %s1102_s8  }
 0x164 PF: > { %s1738_s16 = sld [smem:[#allocation17_spill]]  ;;  %s655_s22 = sand.u32 1, %s1069_s20  }
 0x165   : > { %p1740_p9 = scmp.ge.s32.totalorder %s1089_s24, 2  ;;  %s656_s27 = scalar_lea.sflag [#allocation6], %s655_s22 }
 0x16a   : > { %p1739_p12 = scmp.ne.s32.totalorder %s1738_s16, 0 }
 0x16c   : > { %p811_p4 = pnand %p1740_p9, %p1739_p12 }
 0x16e   : > { %1052 = dma.done.wait (!%p811_p4), %s656_s27, 1024  }
 0x16f   : > { %1054 = vsyncadd (!%p811_p4), %s656_s27, 4294966272  ;;  %s25_s24 = sadd.s32 1, %s1089_s24   ;;  %s1741_s5 = sld [smem:[#allocation16_spill]] }
 0x170   : > { %p22_p10 = scmp.ge.s32.totalorder %s25_s24, 4   ;;  %s1742_s22 = sld [smem:[#allocation19_spill]] }
 0x171   : > { %s1743_s9 = sld [smem:[#allocation18_spill]]  ;;  %s1744_s17 = smov %s1061_s18 }
 0x172   : > { %s1745_s18 = smov %s1065_s19  ;;  %s1746_s19 = smov %s1311_s2 }
 0x173   : > { %s1747_s20 = smov %s1073_s21  ;;  %s1749_s1 = smov %s1085_s23 }
 0x174   :  { %24 = sbr.rel (!%p22_p10) target bundleno = 15 (0xf), region = 99 }
 0x175   : > { %s1748_s21 = smov %s1741_s5 }
 0x177   : > { %s1750_s23 = smov %s1743_s9 }
 0x17b   :  { %661 = vsyncpa [#allocation5], 1 }
 0x17c   :  { %663 = vsyncpa [#allocation5 + $0x1], 1 }
 0x17d   :  { %664 = vsyncpa [#allocation10], 1 }
 0x17e   :  { %666 = vsyncpa [#allocation10 + $0x1], 1 }
 0x17f   :  { %667 = vsyncpa [#allocation6], 1 }
 0x180   :  { %669 = vsyncpa [#allocation6 + $0x1], 1 }
 0x181   :  { %670 = vsyncpa [#allocation7], 1 }
 0x182   :  { %672 = vsyncpa [#allocation7 + $0x1], 1 }

</bundles_post_ra>
